<compile_context>
chip_gen: v7x
topology: tpu7x:2x2x1
jax: 0.10.0
libtpu: 0.0.40
codegen_flags: <defaults>
</compile_context>

<pallas_src>
import functools
import math

import jax
import jax.numpy as jnp
from jax import lax
from jax.experimental import pallas as pl
from jax.experimental.pallas import tpu as pltpu

PI_T = 3.14159265  # the constant the PyTorch module uses for pi


def _round_up(x, m):
    return ((x + m - 1) // m) * m


def _chebyshev(c, m):
    """mlambda[m](c) = cos(m*theta) as a polynomial in c = cos(theta), m in 0..5."""
    if m == 0:
        return jnp.ones_like(c)
    if m == 1:
        return c
    if m == 2:
        return 2.0 * c * c - 1.0
    if m == 3:
        return (4.0 * c * c - 3.0) * c
    if m == 4:
        c2 = c * c
        return 8.0 * c2 * c2 - 8.0 * c2 + 1.0
    if m == 5:
        c2 = c * c
        return ((16.0 * c2 - 20.0) * c2 + 5.0) * c
    raise ValueError(f"m={m} not supported (module supports 0..5)")


def angle_linear_kernel(x_ref, w_ref, scale_ref, xlen_ref, inv_xlen_ref,
                        cos_ref, phi_ref, *, m):
    # x: (tb, D) native dtype; w: (D, tc) raw weight; scale: (1, tc) = 1/||w_col||
    # (renorm folded); xlen/inv_xlen: (tb, 1) f32, hoisted from the kernel.
    logits = jnp.dot(x_ref[...], w_ref[...],
                     preferred_element_type=jnp.float32)          # MXU, (tb, tc)
    logits = logits * scale_ref[...]                              # == cos_theta * |x|

    xlen = xlen_ref[...]                                          # (tb, 1)
    inv_xlen = inv_xlen_ref[...]                                  # (tb, 1)
    tb, tc = logits.shape
    xlen_b = jnp.broadcast_to(xlen, (tb, tc))                     # hoisted, reused twice

    # cos_theta in [-1, 1] only needed for the phi branch.
    cos_theta = jnp.clip(logits * inv_xlen, -1.0, 1.0)
    cos_m_theta = _chebyshev(cos_theta, m)

    # k = floor(m*acos(c)/PI_T) via threshold counting (acos is monotone
    # decreasing); sign = (-1)**k built inside the same loop (no mod).
    k = jnp.zeros_like(cos_theta)
    sign = jnp.ones_like(cos_theta)
    for j in range(1, m + 1):
        hit = cos_theta <= math.cos(j * PI_T / m)
        k = k + hit.astype(jnp.float32)
        sign = jnp.where(hit, -sign, sign)
    phi_theta = sign * cos_m_theta - 2.0 * k

    # cos output: logits already equals cos_theta*|x|; clamp against +/-|x|
    # instead of divide-then-multiply.
    cos_ref[...] = jnp.minimum(jnp.maximum(logits, -xlen_b), xlen_b).astype(cos_ref.dtype)
    phi_ref[...] = (phi_theta * xlen_b).astype(phi_ref.dtype)


def _vmem_bytes(tb, tc, D, xbytes, wbytes, obytes):
    """Conservative per-call VMEM footprint estimate (double-buffered I/O + temps)."""
    return (2 * tb * D * xbytes          # x tile, double-buffered
            + 2 * D * tc * wbytes        # weight tile, double-buffered
            + 4 * tb * tc * obytes       # two output tiles, double-buffered
            + 6 * tb * tc * 4            # f32 epilogue temporaries
            + 4 * tc * 4 + 8 * tb * 4)   # scale / xlen vectors


def angle_linear(x, weight, m=4, tb=None, tc=None):
    """Pallas implementation of AngleLinear.forward (phiflag=True path)."""
    B, D = x.shape
    D2, C = weight.shape
    assert D == D2
    out_dtype = x.dtype

    # ---- Hoisted weight preprocessing: one (1, C) per-column scale ----
    # ww = w.renorm(2,1,1e-5).mul(1e5); cos numerator gets divided by wlen=||ww||,
    # so the whole renorm reduces to a single per-column scale applied to logits.
    w32 = weight.astype(jnp.float32)
    col_norm = jnp.sqrt(jnp.sum(w32 * w32, axis=0, keepdims=True))      # (1, C)
    factor = jnp.where(col_norm > 1e-5, 1e-5 / (col_norm + 1e-7), 1.0)
    wlen = col_norm * factor * 1e5                                      # = ||ww||_col
    col_scale = (factor * 1e5) / jnp.maximum(wlen, 1e-12)               # (1, C)

    # ---- Hoisted per-row ||x|| (computed once, not once per class tile) ----
    x32 = x.astype(jnp.float32)
    x2 = jnp.sum(x32 * x32, axis=1, keepdims=True)                      # (B, 1)
    xlen = jnp.sqrt(x2)
    inv_xlen = lax.rsqrt(jnp.maximum(x2, 1e-30))

    # ---- Padding & tile selection (MXU / lane aligned, VMEM-budgeted) ----
    Bp = _round_up(B, 8)
    Cp = _round_up(C, 128)          # pad classes only to lane width (no tc over-pad)

    xbytes = jnp.dtype(x.dtype).itemsize
    wbytes = jnp.dtype(weight.dtype).itemsize
    obytes = jnp.dtype(out_dtype).itemsize

    if tb is None:
        tb = min(Bp, 256)           # small-batch inference: don't tile batch at all
    Bp = _round_up(Bp, tb)

    auto_tc = tc is None
    if auto_tc:
        budget = 40 << 20           # fits v7x 64 MiB physical with headroom
        tc = 128
        cand = 128
        while cand <= min(Cp, 2048):
            if Cp % cand == 0 and _vmem_bytes(tb, cand, D, xbytes, wbytes, obytes) <= budget:
                tc = cand
            cand += 128
        # v7x megacore: if the whole problem would be a single grid tile, split the
        # class axis so both TensorCores get work.
        if (Bp // tb) * (Cp // tc) == 1 and Cp % 256 == 0:
            tc = Cp // 2
    assert Cp % tc == 0

    xp = jnp.pad(x, ((0, Bp - B), (0, 0))) if Bp != B else x
    xlenp = jnp.pad(xlen, ((0, Bp - B), (0, 0))) if Bp != B else xlen
    invp = jnp.pad(inv_xlen, ((0, Bp - B), (0, 0))) if Bp != B else inv_xlen
    wp = jnp.pad(weight, ((0, 0), (0, Cp - C))) if Cp != C else weight
    sp = jnp.pad(col_scale, ((0, 0), (0, Cp - C))) if Cp != C else col_scale

    kernel = functools.partial(angle_linear_kernel, m=m)
    out_shape = (
        jax.ShapeDtypeStruct((Bp, Cp), out_dtype),
        jax.ShapeDtypeStruct((Bp, Cp), out_dtype),
    )

    # Grid: class axis slow (outer), batch axis fast (inner) -> the large weight
    # tile is held resident across batch tiles; only the small x tile is re-fetched.
    cos_out, phi_out = pl.pallas_call(
        kernel,
        out_shape=out_shape,
        grid=(Cp // tc, Bp // tb),
        in_specs=[
            pl.BlockSpec((tb, D), lambda c, b: (b, 0)),    # x
            pl.BlockSpec((D, tc), lambda c, b: (0, c)),    # raw weight
            pl.BlockSpec((1, tc), lambda c, b: (0, c)),    # per-column scale
            pl.BlockSpec((tb, 1), lambda c, b: (b, 0)),    # xlen
            pl.BlockSpec((tb, 1), lambda c, b: (b, 0)),    # 1/xlen
        ],
        out_specs=(
            pl.BlockSpec((tb, tc), lambda c, b: (b, c)),
            pl.BlockSpec((tb, tc), lambda c, b: (b, c)),
        ),
        compiler_params=pltpu.CompilerParams(
            dimension_semantics=("parallel", "parallel"),
            vmem_limit_bytes=48 << 20,   # raise v5e(16)/v6e(32)/v7x(32) scoped defaults
        ),
    )(xp, wp, sp, xlenp, invp)

    if Bp != B or Cp != C:
        cos_out = cos_out[:B, :C]
        phi_out = phi_out[:B, :C]
    return cos_out, phi_out


def init_angle_linear_weight(key, in_features, out_features):
    """Matches Parameter init: uniform_(-1,1).renorm_(2,1,1e-5).mul_(1e5)."""
    w = jax.random.uniform(key, (in_features, out_features), jnp.float32, -1.0, 1.0)
    col_norm = jnp.sqrt(jnp.sum(w * w, axis=0, keepdims=True))
    factor = jnp.where(col_norm > 1e-5, 1e-5 / (col_norm + 1e-7), 1.0)
    return w * factor * 1e5


def _angle_linear_ref(x, w, m=4):
    """Pure-JAX reference matching the PyTorch forward (phiflag=True)."""
    col_norm = jnp.sqrt(jnp.sum(w * w, axis=0, keepdims=True))
    factor = jnp.where(col_norm > 1e-5, 1e-5 / (col_norm + 1e-7), 1.0)
    ww = w * factor * 1e5
    xlen = jnp.sqrt(jnp.sum(x * x, axis=1, keepdims=True))
    wlen = jnp.sqrt(jnp.sum(ww * ww, axis=0, keepdims=True))
    cos_theta = jnp.clip(x @ ww / xlen / wlen, -1.0, 1.0)
    cos_m_theta = _chebyshev(cos_theta, m)
    theta = jnp.arccos(cos_theta)
    k = jnp.floor(m * theta / PI_T)
    sign = 1.0 - 2.0 * jnp.mod(k, 2.0)
    phi_theta = sign * cos_m_theta - 2.0 * k
    return cos_theta * xlen, phi_theta * xlen


if __name__ == "__main__":
    B, IN_FEATURES, OUT_FEATURES = 8, 64, 128

    key = jax.random.PRNGKey(0)
    k_w, k_x = jax.random.split(key)

    weight = init_angle_linear_weight(k_w, IN_FEATURES, OUT_FEATURES)
    x = jax.random.normal(k_x, (B, IN_FEATURES), dtype=jnp.float32)

    cos_theta, phi_theta = angle_linear(x, weight, m=4)
    jax.block_until_ready((cos_theta, phi_theta))

    assert cos_theta.shape == (B, OUT_FEATURES)
    assert phi_theta.shape == (B, OUT_FEATURES)
    assert cos_theta.dtype == x.dtype and phi_theta.dtype == x.dtype

    cos_ref, phi_ref = _angle_linear_ref(x, weight, m=4)
    assert jnp.allclose(cos_theta, cos_ref, rtol=1e-2, atol=1e-2)
    assert jnp.allclose(phi_theta, phi_ref, rtol=1e-2, atol=1e-2)

    print("KERNEL_OK")
</pallas_src>

<mosaic_0001>
module attributes {stable_mosaic.version = 11 : i64} {
  func.func @angle_linear_kernel(%arg0: i32, %arg1: i32, %arg2: memref<8x64xf32, #tpu.memory_space<vmem>>, %arg3: memref<64x128xf32, #tpu.memory_space<vmem>>, %arg4: memref<1x128xf32, #tpu.memory_space<vmem>>, %arg5: memref<8x1xf32, #tpu.memory_space<vmem>>, %arg6: memref<8x1xf32, #tpu.memory_space<vmem>>, %arg7: memref<8x128xf32, #tpu.memory_space<vmem>>, %arg8: memref<8x128xf32, #tpu.memory_space<vmem>>) attributes {dimension_semantics = [#tpu.dimension_semantics<parallel>, #tpu.dimension_semantics<parallel>], iteration_bounds = array<i64: 1, 1>, scalar_prefetch = 0 : i64, scratch_operands = 0 : i64, tpu.core_type = #tpu.core_type<tc>, window_params = [{transform_indices = @transform_0, window_bounds = array<i64: 8, 64>}, {transform_indices = @transform_1, window_bounds = array<i64: 64, 128>}, {transform_indices = @transform_2, window_bounds = array<i64: 1, 128>}, {transform_indices = @transform_3, window_bounds = array<i64: 8, 1>}, {transform_indices = @transform_4, window_bounds = array<i64: 8, 1>}, {transform_indices = @transform_5, window_bounds = array<i64: 8, 128>}, {transform_indices = @transform_6, window_bounds = array<i64: 8, 128>}]} {
    %c0 = arith.constant 0 : index
    %c0_0 = arith.constant 0 : index
    %0 = vector.load %arg2[%c0, %c0_0] : memref<8x64xf32, #tpu.memory_space<vmem>>, vector<8x64xf32>
    %c0_1 = arith.constant 0 : index
    %c0_2 = arith.constant 0 : index
    %1 = vector.load %arg3[%c0_1, %c0_2] : memref<64x128xf32, #tpu.memory_space<vmem>>, vector<64x128xf32>
    %cst = arith.constant dense<0.000000e+00> : vector<8x128xf32>
    %2 = tpu.matmul %0, %1, %cst {dimension_numbers = #tpu.dot_dimension_numbers<[1], [0], [0], [1], [0, 0, 1, 1], [], []>} : vector<8x64xf32>, vector<64x128xf32>, vector<8x128xf32> -> vector<8x128xf32>
    %c0_3 = arith.constant 0 : index
    %c0_4 = arith.constant 0 : index
    %3 = vector.load %arg4[%c0_3, %c0_4] : memref<1x128xf32, #tpu.memory_space<vmem>>, vector<1x128xf32>
    %4 = vector.broadcast %3 : vector<1x128xf32> to vector<8x128xf32>
    %5 = arith.mulf %2, %4 : vector<8x128xf32>
    %c0_5 = arith.constant 0 : index
    %c0_6 = arith.constant 0 : index
    %6 = vector.load %arg5[%c0_5, %c0_6] : memref<8x1xf32, #tpu.memory_space<vmem>>, vector<8x1xf32>
    %c0_7 = arith.constant 0 : index
    %c0_8 = arith.constant 0 : index
    %7 = vector.load %arg6[%c0_7, %c0_8] : memref<8x1xf32, #tpu.memory_space<vmem>>, vector<8x1xf32>
    %8 = vector.shape_cast %6 : vector<8x1xf32> to vector<8x1xf32>
    %9 = vector.broadcast %8 : vector<8x1xf32> to vector<8x128xf32>
    %10 = vector.broadcast %7 : vector<8x1xf32> to vector<8x128xf32>
    %11 = arith.mulf %5, %10 : vector<8x128xf32>
    %cst_9 = arith.constant -1.000000e+00 : f32
    %cst_10 = arith.constant 1.000000e+00 : f32
    %12 = vector.broadcast %cst_9 : f32 to vector<8x128xf32>
    %13 = arith.maximumf %12, %11 : vector<8x128xf32>
    %14 = vector.broadcast %cst_10 : f32 to vector<8x128xf32>
    %15 = arith.minimumf %14, %13 : vector<8x128xf32>
    %16 = arith.mulf %15, %15 : vector<8x128xf32>
    %cst_11 = arith.constant 8.000000e+00 : f32
    %17 = vector.broadcast %cst_11 : f32 to vector<8x128xf32>
    %18 = arith.mulf %17, %16 : vector<8x128xf32>
    %19 = arith.mulf %18, %16 : vector<8x128xf32>
    %cst_12 = arith.constant 8.000000e+00 : f32
    %20 = vector.broadcast %cst_12 : f32 to vector<8x128xf32>
    %21 = arith.mulf %20, %16 : vector<8x128xf32>
    %22 = arith.subf %19, %21 : vector<8x128xf32>
    %cst_13 = arith.constant 1.000000e+00 : f32
    %23 = vector.broadcast %cst_13 : f32 to vector<8x128xf32>
    %24 = arith.addf %22, %23 : vector<8x128xf32>
    %cst_14 = arith.constant 0.000000e+00 : f32
    %25 = vector.broadcast %cst_14 : f32 to vector<8x128xf32>
    %cst_15 = arith.constant 1.000000e+00 : f32
    %26 = vector.broadcast %cst_15 : f32 to vector<8x128xf32>
    %cst_16 = arith.constant 0.707106769 : f32
    %27 = vector.broadcast %cst_16 : f32 to vector<8x128xf32>
    %28 = arith.cmpf ole, %15, %27 : vector<8x128xf32>
    %29 = arith.extui %28 : vector<8x128xi1> to vector<8x128xi32>
    %30 = arith.sitofp %29 : vector<8x128xi32> to vector<8x128xf32>
    %31 = arith.addf %25, %30 : vector<8x128xf32>
    %cst_17 = arith.constant 0.000000e+00 : f32
    %32 = vector.broadcast %cst_17 : f32 to vector<8x128xf32>
    %33 = arith.subf %32, %26 : vector<8x128xf32>
    %34 = arith.select %28, %33, %26 : vector<8x128xi1>, vector<8x128xf32>
    %cst_18 = arith.constant 1.79489656E-9 : f32
    %35 = vector.broadcast %cst_18 : f32 to vector<8x128xf32>
    %36 = arith.cmpf ole, %15, %35 : vector<8x128xf32>
    %37 = arith.extui %36 : vector<8x128xi1> to vector<8x128xi32>
    %38 = arith.sitofp %37 : vector<8x128xi32> to vector<8x128xf32>
    %39 = arith.addf %31, %38 : vector<8x128xf32>
    %cst_19 = arith.constant 0.000000e+00 : f32
    %40 = vector.broadcast %cst_19 : f32 to vector<8x128xf32>
    %41 = arith.subf %40, %34 : vector<8x128xf32>
    %42 = arith.select %36, %41, %34 : vector<8x128xi1>, vector<8x128xf32>
    %cst_20 = arith.constant -0.707106769 : f32
    %43 = vector.broadcast %cst_20 : f32 to vector<8x128xf32>
    %44 = arith.cmpf ole, %15, %43 : vector<8x128xf32>
    %45 = arith.extui %44 : vector<8x128xi1> to vector<8x128xi32>
    %46 = arith.sitofp %45 : vector<8x128xi32> to vector<8x128xf32>
    %47 = arith.addf %39, %46 : vector<8x128xf32>
    %cst_21 = arith.constant 0.000000e+00 : f32
    %48 = vector.broadcast %cst_21 : f32 to vector<8x128xf32>
    %49 = arith.subf %48, %42 : vector<8x128xf32>
    %50 = arith.select %44, %49, %42 : vector<8x128xi1>, vector<8x128xf32>
    %cst_22 = arith.constant -1.000000e+00 : f32
    %51 = vector.broadcast %cst_22 : f32 to vector<8x128xf32>
    %52 = arith.cmpf ole, %15, %51 : vector<8x128xf32>
    %53 = arith.extui %52 : vector<8x128xi1> to vector<8x128xi32>
    %54 = arith.sitofp %53 : vector<8x128xi32> to vector<8x128xf32>
    %55 = arith.addf %47, %54 : vector<8x128xf32>
    %cst_23 = arith.constant 0.000000e+00 : f32
    %56 = vector.broadcast %cst_23 : f32 to vector<8x128xf32>
    %57 = arith.subf %56, %50 : vector<8x128xf32>
    %58 = arith.select %52, %57, %50 : vector<8x128xi1>, vector<8x128xf32>
    %59 = arith.mulf %58, %24 : vector<8x128xf32>
    %cst_24 = arith.constant 2.000000e+00 : f32
    %60 = vector.broadcast %cst_24 : f32 to vector<8x128xf32>
    %61 = arith.mulf %60, %55 : vector<8x128xf32>
    %62 = arith.subf %59, %61 : vector<8x128xf32>
    %cst_25 = arith.constant 0.000000e+00 : f32
    %63 = vector.broadcast %cst_25 : f32 to vector<8x128xf32>
    %64 = arith.subf %63, %9 : vector<8x128xf32>
    %65 = arith.maximumf %5, %64 : vector<8x128xf32>
    %66 = arith.minimumf %65, %9 : vector<8x128xf32>
    %c0_26 = arith.constant 0 : index
    %c0_27 = arith.constant 0 : index
    %67 = vector.load %arg7[%c0_26, %c0_27] : memref<8x128xf32, #tpu.memory_space<vmem>>, vector<8x128xf32>
    tpu.vector_store %arg7[%c0_26, %c0_27], %66 {strides = array<i32>} : memref<8x128xf32, #tpu.memory_space<vmem>>, vector<8x128xf32>,
    %68 = arith.mulf %62, %9 : vector<8x128xf32>
    %c0_28 = arith.constant 0 : index
    %c0_29 = arith.constant 0 : index
    %69 = vector.load %arg8[%c0_28, %c0_29] : memref<8x128xf32, #tpu.memory_space<vmem>>, vector<8x128xf32>
    tpu.vector_store %arg8[%c0_28, %c0_29], %68 {strides = array<i32>} : memref<8x128xf32, #tpu.memory_space<vmem>>, vector<8x128xf32>,
    return
  }
  func.func @transform_0(%arg0: i32, %arg1: i32) -> (i32, i32) {
    %c0_i32 = arith.constant 0 : i32
    %c0_i32_0 = arith.constant 0 : i32
    return %arg1, %c0_i32 : i32, i32
  }
  func.func @transform_1(%arg0: i32, %arg1: i32) -> (i32, i32) {
    %c0_i32 = arith.constant 0 : i32
    %c0_i32_0 = arith.constant 0 : i32
    return %c0_i32, %arg0 : i32, i32
  }
  func.func @transform_2(%arg0: i32, %arg1: i32) -> (i32, i32) {
    %c0_i32 = arith.constant 0 : i32
    %c0_i32_0 = arith.constant 0 : i32
    return %c0_i32, %arg0 : i32, i32
  }
  func.func @transform_3(%arg0: i32, %arg1: i32) -> (i32, i32) {
    %c0_i32 = arith.constant 0 : i32
    %c0_i32_0 = arith.constant 0 : i32
    return %arg1, %c0_i32 : i32, i32
  }
  func.func @transform_4(%arg0: i32, %arg1: i32) -> (i32, i32) {
    %c0_i32 = arith.constant 0 : i32
    %c0_i32_0 = arith.constant 0 : i32
    return %arg1, %c0_i32 : i32, i32
  }
  func.func @transform_5(%arg0: i32, %arg1: i32) -> (i32, i32) {
    %c0_i32 = arith.constant 0 : i32
    return %arg1, %arg0 : i32, i32
  }
  func.func @transform_6(%arg0: i32, %arg1: i32) -> (i32, i32) {
    %c0_i32 = arith.constant 0 : i32
    return %arg1, %arg0 : i32, i32
  }
}

</mosaic_0001>

<bundles_post_ra>
// kernel: tpu_custom_call.1
= control target key start
LH: loop header
LB: loop body
LE: loop exit
PB: predicated region body
PF: predicated region fallthrough
CT: control target
= control target key end

     0   :  { %12 = vsyncpa [#allocation3], 0  ;;  %s444_s0 = inlined_call_operand.vmem [shape: f32[8,64], index: 0, kind: input, shape index: {}]   ;;  %s445_s1 = inlined_call_operand.hbm [shape: f32[64,128], index: 1, kind: input, shape index: {}]   ;;  %s446_s2 = inlined_call_operand.vmem [shape: f32[1,128], index: 2, kind: input, shape index: {}]   ;;  %s447_s3 = inlined_call_operand.vmem [shape: f32[8,1], index: 3, kind: input, shape index: {}]   ;;  %s448_s4 = inlined_call_operand.vmem [shape: f32[8,1], index: 4, kind: input, shape index: {}]   ;;  %s449_s5 = inlined_call_operand.hbm [shape: f32[8,128], index: 5, kind: output, shape index: {0}]   ;;  %s450_s6 = inlined_call_operand.hbm [shape: f32[8,128], index: 6, kind: output, shape index: {1}]  }
   0x1   :  { %13 = vsyncpa [#allocation4], 0 }
   0x2   :  { %14 = vsyncpa [#allocation7], 0  ;;  %s340_s21 = smov [#allocation2]   ;;  %s268_s25 = scalar_lea.hbm %s445_s1, 1024 }
   0x3   :  { %s22_s22 = sshll.u32 %s340_s21, 4  ;;  %p269_p0 = scmp.ne.s32.totalorder %s445_s1, %s268_s25  ;;  %s23_s22 = int_to_ptr.vmem [resolvable:$true] %s22_s22 }
   0x4   :  { %p272_p1 = scmp.lt.u32.totalorder %s268_s25, %s445_s1 }
   0x6   :  { %p274_p2 = pnand %p272_p1, %p269_p0 }
   0x8   :  { %277 = shalt.err (!%p274_p2)
}
   0x9   :  { %s278_s30 = scalar_lea.vmem %s23_s22, 1024  ;;  %p283_p4 = scmp.lt.s32.totalorder %s23_s22, %s23_s22 }
   0xa   :  { %p279_p3 = scmp.ne.s32.totalorder %s23_s22, %s278_s30  ;;  %p284_p5 = scmp.lt.s32.totalorder %s278_s30, %s278_s30 }
   0xc   :  { %p285_p6 = por %p284_p5, %p283_p4 }
   0xe   :  { %p286_p7 = pnand %p285_p6, %p279_p3 }
  0x10   :  { %289 = shalt.err (!%p286_p7)
}
  0x11   :  { %s341_s7 = smov 128   ;;  %s342_s8 = smov 8  }
  0x12   :  { %28 = dma.hbm_to_vmem [thread:$0]  %s445_s1, 1024, %s23_s22, [#allocation3], %s341_s7, %s341_s7, %s342_s8  }
  0x13   :  { %334 = dma.done.wait [#allocation3], 1024  }
  0x14   :  { %335 = vsyncadd [#allocation3], 4294966272  ;;  %v343_v0 = vmov 0.0|0.0   ;;  %vm344_vm0 = vmmov 0   ;;  %v345_v1 = vmov 0.0   ;;  %v346_v2 = vmov 0  }
  0x15   :  { %245 = vmatprep.subr.bf16.mxu0 %v343_v0  ;;  %242 = vmatprep.mubr.msk.f32.mxu0 %vm344_vm0, %v345_v1  ;;  %v39_v3 = vld [vmem:[#allocation2] sm:$0xff]  ;;  %v40_v4 = vld [vmem:[#allocation2 + $0x8] sm:$0xff]  ;;  %v41_v5 = vld [vmem:[#allocation2 + $0x10] sm:$0xff]  ;;  %vm47_vm1 = vcmask 523264   ;;  %s347_s16 = smov [#allocation5]  }
  0x16   :  { %267 = vset.pattern.permute.xlu0 %v346_v2  ;;  %v246_v6 = vpack.c.bf16 %v40_v4, %v39_v3  ;;  %v42_v7 = vld [vmem:[#allocation2 + $0x18] sm:$0xff]  ;;  %v130_v9 = vld [vmem:[%s448_s4] sm:$0xff]  ;;  %v44_v11 = vld [vmem:[#allocation2 + $0x28] sm:$0xff]  ;;  %s187_s17 = sshll.u32 %s347_s16, 4  ;;  %s188_s17 = int_to_ptr.vmem [resolvable:$true] %s187_s17 }
  0x17   :  { %v249_v8 = vpack.c.bf16 %v42_v7, %v41_v5  ;;  %v43_v10 = vld [vmem:[#allocation2 + $0x20] sm:$0xff]  ;;  %138 = vperm.xlu0 %267, %v130_v9   ;;  %v45_v14 = vld [vmem:[#allocation2 + $0x30] sm:$0xff]  ;;  %v46_v15 = vld [vmem:[#allocation2 + $0x38] sm:$0xff]  ;;  %p295_p9 = scmp.lt.s32.totalorder %s188_s17, %s188_s17 }
  0x18   :  { %247 = vmatpush3.bf16.msra.mxu0 %v246_v6  ;;  %v129_v12 = vld [vmem:[%s447_s3] sm:$0xff]  ;;  %v252_v13 = vpack.c.bf16 %v44_v11, %v43_v10  ;;  %v255_v16 = vpack.c.bf16 %v46_v15, %v45_v14 }
  0x19   :  { %248 = vmatprep.subr.bf16.mxu0 %v343_v0  ;;  %v38_v17 = vld [vmem:[%s444_s0] sm:$0xff]  ;;  %s290_s0 = scalar_lea.vmem %s188_s17, 128 }
  0x1a   :  { %v211_v20 = vld [vmem:[%s446_s2] ss:$0 sm:$0xff]  ;;  %p291_p8 = scmp.ne.s32.totalorder %s188_s17, %s290_s0  ;;  %p296_p10 = scmp.lt.s32.totalorder %s290_s0, %s290_s0 }
  0x1b   :  { %133 = vperm.xlu0 %267, %v129_v12  }
  0x1c   :  { %250 = vmatpush3.bf16.msra.mxu0 %v249_v8  ;;  %p297_p11 = por %p296_p10, %p295_p9 }
  0x1d   :  { %251 = vmatprep.subr.bf16.mxu0 %v343_v0 }
  0x1e   :  { %p298_p12 = pnand %p297_p11, %p291_p8 }
  0x20   :  { %253 = vmatpush3.bf16.msra.mxu0 %v252_v13 }
  0x21   :  { %254 = vmatprep.subr.bf16.mxu0 %v343_v0 }
  0x24   :  { %256 = vmatpush3.bf16.msra.mxu0 %v255_v16 }
  0x27   :  { %243 = vmatmul.mubr.msk.f32.vlgmr.msra.gmra.mrb[0].mxu0 %vm47_vm1, %v38_v17 }
  0x96   :  { %v139_v18 = vpop.permute.xlu0 %138 }
  0x9a   :  { %v134_v19 = vpop.permute.xlu0 %133 }
  0x9b   :  { %v175_v21 = vsub.f32 0.0, %v134_v19 }
  0xfa   :  { %v117_v22 = vpop.f32.mrb[0].mxu0 }
  0xfb   :  { %v128_v23 = vmul.f32 %v211_v20, %v117_v22  ;;  %v244_v24 = vpop.f32.mrb[1].mxu0 }
  0xfd   :  { %v141_v25 = vmul.f32 %v139_v18, %v128_v23  ;;  %v176_v26 = vmax.f32 %v128_v23, %v175_v21 }
  0xff   :  { %v212_v27 = vclamps-f32 %v141_v25, 1.0  ;;  %v177_v28 = vmin.f32 %v176_v26, %v134_v19 }
 0x101   :  { %178 = vst [vmem:[#allocation5] sm:$0xff] %v177_v28  ;;  %v144_v29 = vmul.f32 %v212_v27, %v212_v27  ;;  %vm149_vm2 = vcmp.le.f32.partialorder %v212_v27, 0.70710677  ;;  %vm154_vm3 = vcmp.le.f32.partialorder %v212_v27, 1.7948966e-09 }
 0x102   :  { %vm160_vm4 = vcmp.le.f32.partialorder %v212_v27, -0.70710677 }
 0x103   :  { %301 = shalt.err (!%p298_p12)
}
 0x104   :  { %s302_s19 = scalar_lea.hbm %s449_s5, 128 }
 0x105   :  { %p303_p13 = scmp.ne.s32.totalorder %s449_s5, %s302_s19  ;;  %p306_p0 = scmp.lt.u32.totalorder %s302_s19, %s449_s5 }
 0x107   :  { %p308_p1 = pnand %p306_p0, %p303_p13 }
 0x109   :  { %311 = shalt.err (!%p308_p1)
}
 0x10a   :  { %190 = dma.vmem_to_hbm [thread:$0]  %s188_s17, 128, %s449_s5, [#allocation4]   ;;  %v213_v30 = vsel %vm149_vm2, 1.0, %v345_v1  ;;  %v348_v31 = vmov 1.0   ;;  %v214_v33 = vsel %vm154_vm3, 1.0, %v345_v1  ;;  %v145_v34 = vmul.f32 8.0, %v144_v29 }
 0x10b   :  { %v153_v32 = vsel %vm149_vm2, -1.0, %v348_v31  ;;  %v157_v35 = vadd.f32 %v214_v33, %v213_v30  ;;  %v215_v37 = vsel %vm160_vm4, 1.0, %v345_v1  ;;  %vm166_vm5 = vcmp.le.f32.partialorder %v212_v27, -1.0  ;;  %s349_s5 = smov [#allocation6]  }
 0x10c   :  { %v158_v36 = vsub.f32 0.0, %v153_v32  ;;  %v146_v38 = vmul.f32 %v145_v34, %v144_v29  ;;  %v216_v43 = vsel %vm166_vm5, 1.0, %v345_v1  ;;  %s197_s26 = sshll.u32 %s349_s5, 4  ;;  %s198_s26 = int_to_ptr.vmem [resolvable:$true] %s197_s26 }
 0x10d   :  { %v163_v40 = vadd.f32 %v215_v37, %v157_v35  ;;  %s312_s27 = scalar_lea.vmem %s198_s26, 128  ;;  %p317_p3 = scmp.lt.s32.totalorder %s198_s26, %s198_s26 }
 0x10e   :  { %v159_v39 = vsel %vm154_vm3, %v158_v36, %v153_v32  ;;  %v147_v42 = vsub.f32 %v146_v38, %v145_v34  ;;  %p313_p2 = scmp.ne.s32.totalorder %s198_s26, %s312_s27  ;;  %p318_p4 = scmp.lt.s32.totalorder %s312_s27, %s312_s27 }
 0x10f   :  { %v164_v41 = vsub.f32 0.0, %v159_v39  ;;  %v169_v45 = vadd.f32 %v216_v43, %v163_v40 }
 0x110   :  { %v148_v46 = vadd.f32 1.0, %v147_v42  ;;  %p319_p5 = por %p318_p4, %p317_p3 }
 0x111   :  { %v165_v44 = vsel %vm160_vm4, %v164_v41, %v159_v39  ;;  %v173_v50 = vmul.f32 2.0, %v169_v45 }
 0x112   :  { %v170_v47 = vsub.f32 0.0, %v165_v44  ;;  %p320_p6 = pnand %p319_p5, %p313_p2 }
 0x114   :  { %v171_v48 = vsel %vm166_vm5, %v170_v47, %v165_v44 }
 0x115   :  { %v172_v49 = vmul.f32 %v171_v48, %v148_v46 }
 0x117   :  { %v174_v51 = vsub.f32 %v172_v49, %v173_v50 }
 0x119   :  { %v179_v52 = vmul.f32 %v174_v51, %v134_v19 }
 0x11b   :  { %180 = vst [vmem:[#allocation6] sm:$0xff] %v179_v52 }
 0x11c   :  { %323 = shalt.err (!%p320_p6)
}
 0x11d   :  { %s324_s30 = scalar_lea.hbm %s450_s6, 128 }
 0x11e   :  { %p325_p7 = scmp.ne.s32.totalorder %s450_s6, %s324_s30  ;;  %p328_p8 = scmp.lt.u32.totalorder %s324_s30, %s450_s6 }
 0x120   :  { %p330_p9 = pnand %p328_p8, %p325_p7 }
 0x122   :  { %333 = shalt.err (!%p330_p9)
}
 0x123   :  { %200 = dma.vmem_to_hbm [thread:$0]  %s198_s26, 128, %s450_s6, [#allocation7]  }
 0x124   :  { %336 = dma.done.wait [#allocation4], 128  }
 0x125   :  { %337 = vsyncadd [#allocation4], 4294967168 }
 0x126   :  { %338 = dma.done.wait [#allocation7], 128  }
 0x127   :  { %339 = vsyncadd [#allocation7], 4294967168 }
 0x128   :  { %207 = vsyncpa [#allocation3], 1 }
 0x129   :  { %208 = vsyncpa [#allocation4], 1 }
 0x12a   :  { %209 = vsyncpa [#allocation7], 1 }

</bundles_post_ra>
